<compile_context>
chip_gen: v6e
topology: v6e:2x2x1
jax: 0.10.0
libtpu: 0.0.40
codegen_flags: <defaults>
</compile_context>

<pallas_src>
import math

import jax
import jax.numpy as jnp
from jax.experimental import pallas as pl
from jax.experimental.pallas import tpu as pltpu

_LANE = 128
_VMEM_LIMIT = 48 * 1024 * 1024     # scoped-VMEM request: > v5e's 16 MiB default, < v7x's 64 MiB
_BLOCK_BUDGET = 4 * 1024 * 1024    # per x/out block; 4 double-buffered blocks ≈ 16 MiB << limit


# ---------------------------------------------------------------------------
# Main path: sublane-dense (TS, 128) tiles, one sample per grid-row step.
# ---------------------------------------------------------------------------
def _drop_path_rows_kernel(x_ref, scale_ref, o_ref):
    # x_ref / o_ref: (TS, 128) tile of sample b.  scale_ref: (B,) f32 in SMEM.
    b = pl.program_id(0)
    s = scale_ref[b].astype(o_ref.dtype)        # scalar; multiply stays in x.dtype
    o_ref[...] = (x_ref[...] * s).astype(o_ref.dtype)


def _pick_row_tile(rows, batch, itemsize):
    """Largest sublane tile (multiple of 8, or full) under the per-block budget,
    keeping enough parallel grid steps for v7x's two TensorCores."""
    max_rows = max(8, (_BLOCK_BUDGET // (_LANE * itemsize)) // 8 * 8)
    ts = min(rows, max_rows)
    # Target >= 8 total grid steps when the tensor is big enough (megacore +
    # pipeline depth); tiny tensors keep ts == rows (full-dim block is legal).
    while ts > 8 and batch * pl.cdiv(rows, ts) < 8:
        ts = max(8, (ts // 2) // 8 * 8)
    return ts


def _drop_path_sublane_dense(x3, scale_f32, *, row_tile, donate_x):
    B, rows, _ = x3.shape
    ts = row_tile if row_tile is not None else _pick_row_tile(
        rows, B, x3.dtype.itemsize)
    grid = (B, pl.cdiv(rows, ts))
    return pl.pallas_call(
        _drop_path_rows_kernel,
        out_shape=jax.ShapeDtypeStruct(x3.shape, x3.dtype),
        grid_spec=pltpu.PrefetchScalarGridSpec(
            num_scalar_prefetch=0,
            grid=grid,
            in_specs=[
                pl.BlockSpec((None, ts, _LANE), lambda b, j: (b, j, 0)),
                # (B,) per-sample scale, resident in SMEM for the whole grid.
                pl.BlockSpec(memory_space=pltpu.MemorySpace.SMEM),
            ],
            out_specs=pl.BlockSpec((None, ts, _LANE), lambda b, j: (b, j, 0)),
        ),
        compiler_params=pltpu.CompilerParams(
            dimension_semantics=("parallel", "parallel"),
            vmem_limit_bytes=_VMEM_LIMIT),
        cost_estimate=pl.CostEstimate(
            flops=B * rows * _LANE,
            transcendentals=0,
            bytes_accessed=2 * B * rows * _LANE * x3.dtype.itemsize + B * 4),
        input_output_aliases={0: 0} if donate_x else {},
    )(x3, scale_f32)


# ---------------------------------------------------------------------------
# Fallback path (F % 128 != 0): lane-tiled (B, TF) blocks with cdiv tail mask.
# ---------------------------------------------------------------------------
def _drop_path_lanes_kernel(x_ref, scale_ref, o_ref):
    # x_ref / o_ref: (B, TF); scale_ref: (B, 1) in x.dtype, resident.
    o_ref[...] = (x_ref[...] * scale_ref[...]).astype(o_ref.dtype)


def _pick_lane_tile(batch, features, itemsize):
    max_elems = max(
        _LANE, (_BLOCK_BUDGET // (itemsize * max(batch, 1))) // _LANE * _LANE)
    if features <= max_elems:
        if features > 2 * _LANE:
            # >= 2 lane-dense grid steps so v7x can split across both cores.
            half = pl.cdiv(pl.cdiv(features, 2), _LANE) * _LANE
            return min(max_elems, half)
        return features                      # tiny: single full-width block
    return max_elems


def _drop_path_lane_tiled(x2, scale_f32, *, feature_tile, donate_x):
    B, F = x2.shape
    # Cast the per-sample scale to x.dtype in the wrapper -> no in-kernel upcast.
    scale2 = scale_f32.astype(x2.dtype).reshape(B, 1)
    tf = feature_tile if feature_tile is not None else _pick_lane_tile(
        B, F, x2.dtype.itemsize)
    grid = (pl.cdiv(F, tf),)
    return pl.pallas_call(
        _drop_path_lanes_kernel,
        out_shape=jax.ShapeDtypeStruct((B, F), x2.dtype),
        grid_spec=pltpu.PrefetchScalarGridSpec(
            num_scalar_prefetch=0,
            grid=grid,
            in_specs=[
                pl.BlockSpec((B, tf), lambda j: (0, j)),   # feature tile j
                pl.BlockSpec((B, 1), lambda j: (0, 0)),    # per-sample scale, resident
            ],
            out_specs=pl.BlockSpec((B, tf), lambda j: (0, j)),
        ),
        compiler_params=pltpu.CompilerParams(
            dimension_semantics=("parallel",),
            vmem_limit_bytes=_VMEM_LIMIT),
        cost_estimate=pl.CostEstimate(
            flops=B * F,
            transcendentals=0,
            bytes_accessed=2 * B * F * x2.dtype.itemsize + B * x2.dtype.itemsize),
        input_output_aliases={0: 0} if donate_x else {},
    )(x2, scale2)


# ---------------------------------------------------------------------------
# Public wrapper (forward pass of DropPath).
# ---------------------------------------------------------------------------
def drop_path(x, drop_prob: float = 0.0, training: bool = False, *,
              key=None, row_tile=None, feature_tile=None, donate_x=False):
    """Per-sample stochastic depth. drop_prob / training must be static."""
    if drop_prob == 0.0 or not training:
        return x
    if key is None:
        raise ValueError("drop_path in training mode requires a PRNG key")

    keep_prob = 1.0 - drop_prob
    orig_shape = x.shape
    B = orig_shape[0]
    F = math.prod(orig_shape[1:])
    if F == 0:
        return x

    # Per-sample Bernoulli mask (torch recipe: floor(keep_prob + U[0,1))),
    # with the 1/keep_prob rescale folded in -> one multiply per element.
    u = jax.random.uniform(key, (B,), dtype=jnp.float32)
    scale = jnp.floor(keep_prob + u) / keep_prob        # (B,) in {0, 1/keep_prob}

    if F % _LANE == 0:
        out = _drop_path_sublane_dense(
            x.reshape(B, F // _LANE, _LANE), scale,
            row_tile=row_tile, donate_x=donate_x)
    else:
        out = _drop_path_lane_tiled(
            x.reshape(B, F), scale,
            feature_tile=feature_tile, donate_x=donate_x)
    return out.reshape(orig_shape)


if __name__ == "__main__":
    drop_prob = 0.25
    keep_prob = 1.0 - drop_prob

    key = jax.random.PRNGKey(0)
    kx, kmask, kx2, kx3 = jax.random.split(key, 4)

    # Case 1: ViT token tensor (B, N, D) = (2, 8, 32), f32. F = 256 -> sublane-dense path.
    B, N, D = 2, 8, 32
    x = jax.random.normal(kx, (B, N, D), dtype=jnp.float32)
    out = jax.block_until_ready(drop_path(x, drop_prob, training=True, key=kmask))
    u = jax.random.uniform(kmask, (B,), dtype=jnp.float32)
    mask = jnp.floor(keep_prob + u)                      # (B,) in {0, 1}
    ref = (x / keep_prob) * mask[:, None, None]
    assert out.shape == x.shape
    assert jnp.allclose(out, ref, atol=1e-6, rtol=1e-5), "case1 mismatch"

    # Case 2: conv-style tensor (2, 4, 16, 16), F = 1024 -> sublane-dense path, rows=8.
    x2 = jax.random.normal(kx2, (2, 4, 16, 16), dtype=jnp.float32)
    out2 = jax.block_until_ready(drop_path(x2, drop_prob, training=True, key=kmask))
    u2 = jax.random.uniform(kmask, (2,), dtype=jnp.float32)
    mask2 = jnp.floor(keep_prob + u2)
    ref2 = (x2 / keep_prob) * mask2[:, None, None, None]
    assert jnp.allclose(out2, ref2, atol=1e-6, rtol=1e-5), "case2 mismatch"

    # Case 3: bf16 input -> multiply stays in bf16 (no f32 round-trip in-kernel).
    xb = x.astype(jnp.bfloat16)
    outb = jax.block_until_ready(drop_path(xb, drop_prob, training=True, key=kmask))
    refb = xb.astype(jnp.float32) * (mask / keep_prob)[:, None, None]
    assert outb.dtype == jnp.bfloat16
    assert jnp.allclose(outb.astype(jnp.float32), refb, atol=5e-2, rtol=2e-2), "case3 mismatch"

    # Case 4: F = 4*15*15 = 900 (not a multiple of 128) -> lane-tiled fallback;
    # forced 128-wide tile exercises the cdiv grid + masked tail store.
    x4 = jax.random.normal(kx3, (2, 4, 15, 15), dtype=jnp.float32)
    out4 = jax.block_until_ready(
        drop_path(x4, drop_prob, training=True, key=kmask, feature_tile=128))
    u4 = jax.random.uniform(kmask, (2,), dtype=jnp.float32)
    mask4 = jnp.floor(keep_prob + u4)
    ref4 = (x4 / keep_prob) * mask4[:, None, None, None]
    assert jnp.allclose(out4, ref4, atol=1e-6, rtol=1e-5), "case4 mismatch"

    # Identity fast paths (drop_prob == 0 or eval mode), as in the module.
    assert drop_path(x, 0.0, training=True) is x
    assert drop_path(x, drop_prob, training=False) is x

    print("KERNEL_OK")
</pallas_src>

<mosaic_0001>
module attributes {stable_mosaic.version = 11 : i64} {
  func.func @_drop_path_rows_kernel(%arg0: i32, %arg1: i32, %arg2: memref<1x2x128xf32, #tpu.memory_space<vmem>>, %arg3: memref<2xf32, #tpu.memory_space<smem>>, %arg4: memref<1x2x128xf32, #tpu.memory_space<vmem>>) attributes {dimension_semantics = [#tpu.dimension_semantics<parallel>, #tpu.dimension_semantics<parallel>], iteration_bounds = array<i64: 2, 1>, scalar_prefetch = 0 : i64, scratch_operands = 0 : i64, tpu.core_type = #tpu.core_type<tc>, window_params = [{transform_indices = @transform_0, window_bounds = array<i64: 1, 2, 128>}, {transform_indices = @transform_1, window_bounds = array<i64: 2>}, {transform_indices = @transform_2, window_bounds = array<i64: 1, 2, 128>}]} {
    %0 = arith.index_cast %arg0 : i32 to index
    %1 = memref.load %arg3[%0] : memref<2xf32, #tpu.memory_space<smem>>
    %c0 = arith.constant 0 : index
    %c0_0 = arith.constant 0 : index
    %c0_1 = arith.constant 0 : index
    %2 = vector.load %arg2[%c0, %c0_0, %c0_1] : memref<1x2x128xf32, #tpu.memory_space<vmem>>, vector<1x2x128xf32>
    %3 = vector.shape_cast %2 : vector<1x2x128xf32> to vector<2x128xf32>
    %4 = vector.broadcast %1 : f32 to vector<2x128xf32>
    %5 = arith.mulf %3, %4 : vector<2x128xf32>
    %c0_2 = arith.constant 0 : index
    %c0_3 = arith.constant 0 : index
    %c0_4 = arith.constant 0 : index
    %6 = vector.load %arg4[%c0_2, %c0_3, %c0_4] : memref<1x2x128xf32, #tpu.memory_space<vmem>>, vector<1x2x128xf32>
    %7 = vector.shape_cast %6 : vector<1x2x128xf32> to vector<2x128xf32>
    %8 = vector.shape_cast %5 : vector<2x128xf32> to vector<1x2x128xf32>
    tpu.vector_store %arg4[%c0_2, %c0_3, %c0_4], %8 {strides = array<i32>} : memref<1x2x128xf32, #tpu.memory_space<vmem>>, vector<1x2x128xf32>,
    return
  }
  func.func @transform_0(%arg0: i32, %arg1: i32) -> (i32, i32, i32) {
    %c0_i32 = arith.constant 0 : i32
    %c0_i32_0 = arith.constant 0 : i32
    return %arg0, %arg1, %c0_i32 : i32, i32, i32
  }
  func.func @transform_1(%arg0: i32, %arg1: i32) -> i32 {
    %c0_i32 = arith.constant 0 : i32
    %c0_i32_0 = arith.constant 0 : i32
    return %c0_i32 : i32
  }
  func.func @transform_2(%arg0: i32, %arg1: i32) -> (i32, i32, i32) {
    %c0_i32 = arith.constant 0 : i32
    %c0_i32_0 = arith.constant 0 : i32
    return %arg0, %arg1, %c0_i32 : i32, i32, i32
  }
}

</mosaic_0001>

<bundles_post_ra>
// kernel: tpu_custom_call.1
= control target key start
LH: loop header
LB: loop body
LE: loop exit
PB: predicated region body
PF: predicated region fallthrough
CT: control target
= control target key end

     0   :  { %7 = vsyncpa [#allocation3], 0  ;;  %s699_s0 = inlined_call_operand.hbm [shape: f32[2,2,128], index: 0, kind: input, shape index: {}]   ;;  %s700_s1 = inlined_call_operand.vmem [shape: f32[2], index: 1, kind: input, shape index: {}]   ;;  %s701_s2 = inlined_call_operand.hbm [shape: f32[2,2,128], index: 2, kind: output, shape index: {}]  }
   0x1   :  { %9 = vsyncpa [#allocation3 + $0x1], 0 }
   0x2   :  { %10 = vsyncpa [#allocation5], 0 }
   0x3   :  { %11 = vsyncpa [#allocation4], 0 }
   0x4   :  { %13 = vsyncpa [#allocation4 + $0x1], 0  ;;  %s537_s9 = smov 0   ;;  %s539_s10 = smov 0  }
   0x5   :  { %s541_s11 = smov 0   ;;  %s543_s12 = smov 0  }
   0x6   :  { %s545_s13 = smov 0   ;;  %s547_s14 = smov 0  }
   0x7 LB: > { %s302_s15 = sadd.s32 4294967295, %s517_s14   ;;  %s303_s16 = sadd.s32 4294967294, %s517_s14   ;;  %s517_s14 = sphi %s547_s14, %s19_s14   ;;  %s513_s13 = sphi %s545_s13, %s718_s13   ;;  %s509_s12 = sphi %s543_s12, %s717_s12   ;;  %s505_s11 = sphi %s541_s11, %s716_s11   ;;  %s501_s10 = sphi %s539_s10, %s715_s10   ;;  %s497_s9 = sphi %s537_s9, %s714_s9  }
   0x8   : > { %p53_p0 = scmp.ne.s32.totalorder %s501_s10, %s497_s9  ;;  %p571_p1 = scmp.eq.s32.totalorder %s302_s15, 0 }
   0x9   : > { %p575_p2 = scmp.eq.s32.totalorder %s302_s15, 1  ;;  %p106_p3 = scmp.eq.s32.totalorder %s303_s16, 1 }
   0xa   : > { %p581_p4 = por %p571_p1, %p53_p0  ;;  %p304_p5 = scmp.ge.s32.totalorder %s517_s14, 1 }
   0xb   : > { %p586_p6 = por %p106_p3, %p53_p0  ;;  %p113_p7 = scmp.lt.s32.totalorder %s517_s14, 3 }
   0xc   : > { %s705_s19 = scalar_select %p581_p4, 1, 0 }
   0xd   : > { %s706_s20 = scalar_select %p586_p6, 1, 0 }
   0xe   : > { %s126_s23 = sshll.u32 %s700_s1, 4  ;;  %p594_p8 = pnand %p304_p5, %p113_p7  ;;  %s127_s23 = int_to_ptr.vmem [resolvable:$true] %s126_s23 }
   0xf   : > { %s31_s26 = sadd.s32 1, %s513_s13  ;;  %s40_s27 = sadd.s32 1, %s505_s11 }
  0x10   : > { %p325_p10 = pneg %p594_p8  ;;  %p33_p12 = scmp.ge.s32.totalorder %s31_s26, 2 }
  0x11   : > { %s390_s28 = scalar_lea.vmem %s127_s23, 16  ;;  %p398_p7 = scmp.lt.s32.totalorder %s127_s23, %s127_s23 }
  0x12   : > { %p603_p11 = pnand %p325_p10, %p571_p1  ;;  %p391_p13 = scmp.ne.s32.totalorder %s127_s23, %s390_s28 }
  0x13   : > { %p399_p6 = scmp.lt.s32.totalorder %s390_s28, %s390_s28 }
  0x14   : > { %p392_p0 = pneg %p603_p11 }
  0x15   : > { %p400_p9 = por %p399_p6, %p398_p7 }
  0x16   : > { %p393_p3 = pnand %p392_p0, %p391_p13 }
  0x18   : > { %p394_p5 = pneg %p393_p3 }
  0x1a   : > { %p401_p4 = pnand %p400_p9, %p394_p5 }
  0x1c   : > { %404 = shalt.err (!%p401_p4)
}
  0x1d   : > { %s519_s29 = smov [#allocation6]   ;;  %s720_s26 = smov (%p33_p12, %s31_s26), 0 }
  0x1e   : > { %328 = dma.vmem_to_smem (!%p603_p11), %s127_s23, 16, %s519_s29, [#allocation5]  }
  0x1f   : > { %p47_p10 = scmp.ne.s32.totalorder %s505_s11, %s501_s10  ;;  %p48_p6 = scmp.eq.s32.totalorder %s517_s14, 0 }
  0x20   : > { %s35_s30 = ssub.s32 %s513_s13, %s720_s26  ;;  %p338_p4 = scmp.lt.s32.totalorder %s517_s14, 2 }
  0x21   : > { %p38_p9 = scmp.eq.s32.totalorder %s35_s30, 0  ;;  %p49_p13 = por %p48_p6, %p47_p10 }
  0x22   : > { %p623_p0 = por %p575_p2, %p47_p10  ;;  %s137_s4 = sand.u32 1, %s505_s11  }
  0x23   : > { %s629_s5 = scalar_select %p38_p9, %s505_s11, %s40_s27  }
  0x24   : > { %s307_s6 = sshll.u32 %s137_s4, 1  ;;  %s308_s7 = sshll.u32 %s513_s13, 5 }
  0x25   : > { %s147_s16 = scalar_lea.hbm %s699_s0, %s308_s7  ;;  %s141_s21 = scalar_lea.vmem [#allocation2], %s307_s6 }
  0x26   : > { %s149_s22 = sshll.u32 %s141_s21, 4  ;;  %p635_p11 = pnand %p338_p4, %p49_p13  ;;  %s150_s22 = int_to_ptr.vmem [resolvable:$true] %s149_s22 }
  0x27   : > { %s138_s18 = scalar_lea.sflag [#allocation3], %s137_s4  ;;  %s418_s25 = scalar_lea.vmem %s150_s22, 32 }
  0x28   : > { %p407_p2 = pneg %p635_p11  ;;  %p419_p12 = scmp.ne.s32.totalorder %s150_s22, %s418_s25 }
  0x29   : > { %s520_s27 = smov [#allocation2]  }
  0x2a   : > { %p421_p3 = pnand %p419_p12, %p407_p2  ;;  %s423_s28 = sshll.u32 %s520_s27, 4  ;;  %s424_s28 = int_to_ptr.vmem [resolvable:$false] %s423_s28 }
  0x2b   : > { %s425_s29 = scalar_lea.vmem %s424_s28, 64  ;;  %p426_p7 = scmp.lt.s32.totalorder %s150_s22, %s424_s28 }
  0x2c   : > { %p422_p5 = pneg %p421_p3  ;;  %p427_p10 = scmp.lt.s32.totalorder %s425_s29, %s418_s25 }
  0x2e   : > { %p428_p6 = por %p427_p10, %p426_p7 }
  0x30   : > { %p429_p9 = pnand %p428_p6, %p422_p5 }
  0x32   : > { %432 = shalt.err (!%p429_p9)
}
  0x33   : > { %332 = dma.hbm_to_vmem [thread:$0]  (!%p635_p11), %s147_s16, 32, %s150_s22, %s138_s18  }
  0x34   : > { %158 = sbr.rel (%p594_p8) target bundleno = 86 (0x56), region = 28  ;;  %s646_s30 = sand.u32 (!%p594_p8), 1, %s501_s10  }
  0x35   : > { %s310_s4 = sshll.u32 (!%p594_p8), %s646_s30, 1  ;;  %s161_s6 = scalar_lea.sflag (!%p594_p8), [#allocation3], %s646_s30 }
  0x36   : > { %s164_s7 = scalar_lea.vmem (!%p594_p8), [#allocation2], %s310_s4  ;;  %p711_p4 = scmp.ne.s32.totalorder (!%p594_p8), %s705_s19, 0 }
  0x39   : > { %484 = dma.done.wait (%p711_p4), %s161_s6, 32  }
  0x3a   : > { %486 = vsyncadd (%p711_p4), %s161_s6, 4294967264 }
  0x3b   : > { %488 = dma.done.wait (%p571_p1), [#allocation5], 16  }
  0x3c   : > { %490 = vsyncadd (%p571_p1), [#allocation5], 4294967280 }
  0x3d   : > { %173 = sfence }
  0x3e   : > { %s190_s24 = sld [smem:[#allocation6 + %s509_s12]]  ;;  %v191_v0 = vld [vmem:[%s164_s7] sm:$0x3]  ;;  %s189_s8 = scalar_lea.vmem [#allocation7], %s310_s4 }
  0x3f   : > { %s210_s15 = sshll.u32 %s189_s8, 4  ;;  %s314_s16 = sshll.u32 %s509_s12, 5  ;;  %s211_s15 = int_to_ptr.vmem [resolvable:$true] %s210_s15 }
  0x40   : > { %s208_s22 = scalar_lea.hbm %s701_s2, %s314_s16  ;;  %s196_s17 = scalar_lea.sflag [#allocation4], %s646_s30 }
  0x41   : > { %s433_s23 = scalar_lea.vmem %s211_s15, 32  ;;  %s521_s18 = smov [#allocation7]  }
  0x42   : > { %p434_p1 = scmp.ne.s32.totalorder %s211_s15, %s433_s23  ;;  %s437_s25 = sshll.u32 %s521_s18, 4  ;;  %s438_s25 = int_to_ptr.vmem [resolvable:$false] %s437_s25 }
  0x43   : > { %s439_s27 = scalar_lea.vmem %s438_s25, 64  ;;  %p440_p11 = scmp.lt.s32.totalorder %s211_s15, %s438_s25 }
  0x44   : > { %v192_v1 = vstv %s190_s24  ;;  %p435_p8 = pnand %p434_p1, %p623_p0  ;;  %p441_p2 = scmp.lt.s32.totalorder %s439_s27, %s433_s23 }
  0x45   : > { %v193_v2 = vmul.f32 %v192_v1, %v191_v0 }
  0x46   : > { %p436_p13 = pneg %p435_p8  ;;  %p442_p12 = por %p441_p2, %p440_p11 }
  0x47   : > { %194 = vst [vmem:[%s189_s8] sm:$0x3] %v193_v2 }
  0x48   : > { %p443_p3 = pnand %p442_p12, %p436_p13 }
  0x4a   : > { %446 = shalt.err (!%p443_p3)
}
  0x4b   : > { %s447_s12 = scalar_lea.hbm %s208_s22, 32  ;;  %s451_s30 = scalar_lea.hbm %s701_s2, 64 }
  0x4c   : > { %p448_p5 = scmp.ne.s32.totalorder %s208_s22, %s447_s12  ;;  %p452_p6 = scmp.lt.s32.totalorder %s208_s22, %s701_s2 }
  0x4d   : > { %p453_p9 = scmp.lt.s32.totalorder %s451_s30, %s447_s12 }
  0x4e   : > { %p449_p7 = pnand %p448_p5, %p623_p0 }
  0x4f   : > { %p454_p4 = por %p453_p9, %p452_p6 }
  0x50   : > { %p450_p10 = pneg %p449_p7 }
  0x52   : > { %p455_p1 = pnand %p454_p4, %p450_p10 }
  0x54   : > { %458 = shalt.err (!%p455_p1)
}
  0x55   : > { %323 = dma.vmem_to_hbm [thread:$0]  (%p623_p0), %s211_s15, 32, %s208_s22, %s196_s17  }
  0x56 PF: > { %s222_s7 = sand.u32 1, %s497_s9   ;;  %p712_p8 = scmp.ne.s32.totalorder %s706_s20, 0 }
  0x57   : > { %p713_p13 = scmp.ge.s32.totalorder %s517_s14, 2  ;;  %s223_s24 = scalar_lea.sflag [#allocation4], %s222_s7 }
  0x59   : > { %p334_p11 = pnand %p713_p13, %p712_p8 }
  0x5b   : > { %p335_p2 = pneg %p334_p11 }
  0x5d   : > { %492 = dma.done.wait (%p335_p2), %s223_s24, 32  }
  0x5e   : > { %494 = vsyncadd (%p335_p2), %s223_s24, 4294967264  ;;  %s19_s14 = sadd.s32 1, %s517_s14   ;;  %s714_s9 = smov %s501_s10 }
  0x5f   : > { %p16_p12 = scmp.ge.s32.totalorder %s19_s14, 4   ;;  %s715_s10 = smov %s505_s11 }
  0x60   : > { %s716_s11 = smov %s629_s5  ;;  %s717_s12 = smov %s513_s13 }
  0x61   : > { %s718_s13 = smov %s720_s26  ;;  %18 = sbr.rel (!%p16_p12) target bundleno = 7 (0x7), region = 78 }
  0x66   :  { %228 = vsyncpa [#allocation3], 1 }
  0x67   :  { %230 = vsyncpa [#allocation3 + $0x1], 1 }
  0x68   :  { %231 = vsyncpa [#allocation4], 1 }
  0x69   :  { %233 = vsyncpa [#allocation4 + $0x1], 1 }
  0x6a   :  { %234 = vsyncpa [#allocation5], 1 }
  0x6b   :  { %236 = vsyncpa [#allocation5 + $0x1], 1 }

</bundles_post_ra>
